<compile_context>
chip_gen: v5e
topology: v5e:2x2
jax: 0.10.0
libtpu: 0.0.40
codegen_flags: <defaults>
</compile_context>

<pallas_src>
import numpy as np
import jax
import jax.numpy as jnp
from jax import lax
from jax.experimental import pallas as pl
from jax.experimental.pallas import tpu as pltpu

POOL = 6    # MaxPool2d(kernel_size=6, stride=6)
LANE = 128  # TPU lane width

# The four fixed conv kernels from Image_Transformer.__init__, zero-padded to
# 2x2 cross-correlation taps [w(0,0), w(0,1), w(1,0), w(1,1)].  Used only by
# the independent numpy reference; the Pallas kernel has them baked in.
_CONV_TAPS = np.array(
    [
        [-1.0, 1.0, 0.0, 0.0],   # 1x2 kernel [[-1, 1]]
        [-1.0, 0.0, 1.0, 0.0],   # 2x1 kernel [[-1], [1]]
        [0.0, 1.0, -1.0, 0.0],   # 2x2 kernel [[0, 1], [-1, 0]]
        [1.0, 0.0, 0.0, -1.0],   # 2x2 kernel [[1, 0], [0, -1]]
    ],
    dtype=np.float32,
)


def _image_kernel(x_ref, o_ref):
    H, W, LB = x_ref.shape
    Hp, Wp, _ = o_ref.shape

    x = x_ref[...]                                     # (H, W, LB) float32

    # Hoisted zero pads (JAX does not CSE broadcast_in_dim; build them once).
    # Max shift distance used below is 4 (win6 tree).
    pad_h = jnp.zeros((4, W, LB), jnp.float32)
    pad_w = jnp.zeros((H, 4, LB), jnp.float32)

    def shift_h(a, k=1):
        # a[h, w, b] -> a[h + k, w, b], zero-fill past the bottom edge.
        # H is the leading (un-tiled) dim: pure vreg re-indexing, no lane moves.
        return jnp.concatenate([a[k:], pad_h[:k]], axis=0)

    def shift_w(a, k=1):
        # a[h, w, b] -> a[h, w + k, b], zero-fill past the right edge.
        # W is the sublane dim.
        return jnp.concatenate([a[:, k:], pad_w[:, :k]], axis=1)

    # ---- conv_block: fixed taps baked in, only the 2 nonzero taps kept ------
    x = jnp.maximum(shift_w(x) - x, 0.0)               # [[-1, 1]]          + ReLU
    x = jnp.maximum(shift_h(x) - x, 0.0)               # [[-1], [1]]        + ReLU
    x = jnp.maximum(shift_w(x) - shift_h(x), 0.0)      # [[0, 1], [-1, 0]]  + ReLU
    x = jnp.maximum(x - shift_h(shift_w(x)), 0.0)      # [[1, 0], [0, -1]]  + ReLU

    # ---- pool_block: MaxPool2d(6, 6), floor mode ----------------------------
    # Windowed max over 6 consecutive rows/cols via a 3-step shift-max tree:
    #   t1 covers offsets {0,1}, t2 {0..3}, t3 {0..5}.
    # Zero-fill past the edge never reaches the selected positions 6p / 6q
    # (their full windows are in-bounds) and post-ReLU values are >= 0.
    def win6(a, shift):
        t1 = jnp.maximum(a, shift(a, 1))
        t2 = jnp.maximum(t1, shift(t1, 2))
        return jnp.maximum(t2, shift(t1, 4))

    y = win6(win6(x, shift_h), shift_w)                # y[6p, 6q, b] = 6x6 max

    # Row compaction (leading dim): layout-preserving reshape + take offset 0.
    yh = y[: Hp * POOL].reshape(Hp, POOL, W, LB)[:, 0]           # (Hp, W, LB)

    # Column compaction (sublane dim): Wp static single-sublane slices + concat
    # (tiny: Hp*Wp*LB elements).  No MXU, no select-matrix rebuild per step.
    cols = [yh[:, POOL * q : POOL * q + 1, :] for q in range(Wp)]
    o_ref[...] = jnp.concatenate(cols, axis=1)                   # (Hp, Wp, LB)


def _pick_lane_block(B, H, W, budget_bytes=8 * 1024 * 1024):
    """Batch lane-chunk size: a multiple of 128 sized so the ~12 live f32
    temporaries stay under the budget, while keeping >= 2 grid steps whenever
    the batch allows it (keeps both v7x TensorCores busy; v5e/v6e unaffected).
    """
    per_lane = 12 * H * W * 4
    max_lanes = max(LANE, (budget_bytes // per_lane) // LANE * LANE)
    lb = LANE
    while lb * 2 <= max_lanes and pl.cdiv(B, lb * 2) >= 2:
        lb *= 2
    return lb


def image_transformer_pooled(x_nchw, *, lane_block=None):
    """conv_block + pool_block of Image_Transformer as one Pallas TPU kernel.

    Input:  (B, 1, H, W) float32 (NCHW, single channel).
    Output: (B, H // 6, W // 6) float32 pooled activations.
    """
    B, C, H, W = x_nchw.shape
    if C != 1:
        raise ValueError("Image_Transformer uses single-channel conv layers")
    if H < POOL or W < POOL:
        raise ValueError("MaxPool2d(6, 6) needs H >= 6 and W >= 6")
    Hp, Wp = H // POOL, W // POOL

    lb = lane_block if lane_block is not None else _pick_lane_block(B, H, W)
    if lb % LANE != 0:
        raise ValueError(f"lane_block={lb} must be a multiple of {LANE}")
    n_blocks = pl.cdiv(B, lb)
    Bp = n_blocks * lb

    # Batch-on-lanes re-layout: (B,1,H,W) -> (H, W, Bp), batch padded to the
    # lane-chunk multiple.  Padded (all-zero) images pool to zero and are
    # sliced away after the kernel.
    x = jnp.transpose(x_nchw.reshape(B, H, W).astype(jnp.float32), (1, 2, 0))
    if Bp != B:
        x = jnp.pad(x, ((0, 0), (0, 0), (0, Bp - B)))

    # Scoped-VMEM: only override when a block is genuinely large; never go
    # below the 32 MiB v6e/v7x default and stay <= 46 MiB so v7x's 64 MiB
    # physical VMEM keeps pipelining/scratch headroom.
    in_blk = H * W * lb * 4
    out_blk = Hp * Wp * lb * 4
    vmem_need = 12 * in_blk + 2 * out_blk
    compiler_kwargs = dict(dimension_semantics=("parallel",))
    if vmem_need > 12 * 1024 * 1024:
        compiler_kwargs["vmem_limit_bytes"] = min(
            max(int(1.2 * vmem_need), 32 * 1024 * 1024), 46 * 1024 * 1024)

    cost = pl.CostEstimate(
        flops=int(Bp * H * W * 20),                    # ~8 conv + ~6 pool + shifts
        transcendentals=0,
        bytes_accessed=int(Bp * (H * W + Hp * Wp) * 4),
    )

    pooled = pl.pallas_call(
        _image_kernel,
        out_shape=jax.ShapeDtypeStruct((Hp, Wp, Bp), jnp.float32),
        grid=(n_blocks,),
        in_specs=[pl.BlockSpec((H, W, lb), lambda b: (0, 0, b))],
        out_specs=pl.BlockSpec((Hp, Wp, lb), lambda b: (0, 0, b)),
        compiler_params=pltpu.CompilerParams(**compiler_kwargs),
        cost_estimate=cost,
    )(x)

    # Back to (B, Hp, Wp); drop the lane padding.
    return jnp.transpose(pooled, (2, 0, 1))[:B]


def image_transformer_forward(x_nchw):
    """Full forward: returns the list of token-string lists like the nn.Module."""
    pooled = image_transformer_pooled(x_nchw)                 # (B, Hp, Wp)
    flat = np.asarray(jax.block_until_ready(pooled)).reshape(pooled.shape[0], -1)
    prefix = ["BOS", "TMP", "SEP"]                            # config1DImage.{bos,tmp,sep}
    out = []
    for row in flat.tolist():
        out.append(prefix + [str(int(v)) for v in row])
    # TODO(synk): string/list construction has no Pallas equivalent; done host-side.
    return out


def _reference_pooled(x_nchw):
    """Pure-numpy reference of conv_block + pool_block (PyTorch semantics)."""
    x = np.asarray(x_nchw, dtype=np.float32)[:, 0]            # (B, H, W)
    B, H, W = x.shape

    def shift_w(a):
        out = np.zeros_like(a); out[:, :, :-1] = a[:, :, 1:]; return out

    def shift_h(a):
        out = np.zeros_like(a); out[:, :-1, :] = a[:, 1:, :]; return out

    for taps in _CONV_TAPS:
        x = (taps[0] * x + taps[1] * shift_w(x) + taps[2] * shift_h(x)
             + taps[3] * shift_h(shift_w(x)))
        x = np.maximum(x, 0.0)

    Hp, Wp = H // POOL, W // POOL
    x = x[:, : Hp * POOL, : Wp * POOL].reshape(B, Hp, POOL, Wp, POOL)
    return x.max(axis=(2, 4))


if __name__ == "__main__":
    key = jax.random.PRNGKey(0)
    k1, k2, k3 = jax.random.split(key, 3)

    # Small batch of single-channel images with pixel values in the module's
    # token vocab {0, 1, 2, 3}.
    B, C, H, W = 8, 1, 12, 12
    x = jax.random.randint(k1, (B, C, H, W), 0, 4).astype(jnp.float32)

    pooled = jax.block_until_ready(image_transformer_pooled(x))
    ref = _reference_pooled(np.asarray(x))
    np.testing.assert_allclose(np.asarray(pooled), ref, rtol=0, atol=1e-5)

    # Non-square image with pool remainders (floor-mode MaxPool drops them).
    B2, H2, W2 = 3, 20, 15
    x2 = jax.random.randint(k2, (B2, 1, H2, W2), 0, 4).astype(jnp.float32)
    pooled2 = jax.block_until_ready(image_transformer_pooled(x2))
    np.testing.assert_allclose(np.asarray(pooled2),
                               _reference_pooled(np.asarray(x2)),
                               rtol=0, atol=1e-5)

    # Batch larger than one lane chunk: exercises lane padding + a 2-step grid
    # (default lane_block=128) and a single wide 256-lane block (explicit).
    B3, H3, W3 = 200, 12, 18
    x3 = jax.random.randint(k3, (B3, 1, H3, W3), 0, 4).astype(jnp.float32)
    ref3 = _reference_pooled(np.asarray(x3))
    pooled3 = jax.block_until_ready(image_transformer_pooled(x3))
    np.testing.assert_allclose(np.asarray(pooled3), ref3, rtol=0, atol=1e-5)
    pooled3b = jax.block_until_ready(image_transformer_pooled(x3, lane_block=256))
    np.testing.assert_allclose(np.asarray(pooled3b), ref3, rtol=0, atol=1e-5)

    tokens = image_transformer_forward(x)
    assert len(tokens) == B
    assert all(t[:3] == ["BOS", "TMP", "SEP"] for t in tokens)
    assert all(len(t) == 3 + (H // POOL) * (W // POOL) for t in tokens)

    print("KERNEL_OK")
</pallas_src>

<mosaic_0001>
module attributes {stable_mosaic.version = 11 : i64} {
  func.func @_image_kernel(%arg0: i32, %arg1: memref<12x12x128xf32, #tpu.memory_space<vmem>>, %arg2: memref<2x2x128xf32, #tpu.memory_space<vmem>>) attributes {dimension_semantics = [#tpu.dimension_semantics<parallel>], iteration_bounds = array<i64: 1>, scalar_prefetch = 0 : i64, scratch_operands = 0 : i64, tpu.core_type = #tpu.core_type<tc>, window_params = [{transform_indices = @transform_0, window_bounds = array<i64: 12, 12, 128>}, {transform_indices = @transform_1, window_bounds = array<i64: 2, 2, 128>}]} {
    %c0 = arith.constant 0 : index
    %c0_0 = arith.constant 0 : index
    %c0_1 = arith.constant 0 : index
    %0 = vector.load %arg1[%c0, %c0_0, %c0_1] : memref<12x12x128xf32, #tpu.memory_space<vmem>>, vector<12x12x128xf32>
    %cst = arith.constant 0.000000e+00 : f32
    %1 = vector.broadcast %cst : f32 to vector<4x12x128xf32>
    %cst_2 = arith.constant 0.000000e+00 : f32
    %2 = vector.broadcast %cst_2 : f32 to vector<12x4x128xf32>
    %3 = vector.extract_strided_slice %0 {offsets = [0, 1, 0], sizes = [12, 11, 128], strides = [1, 1, 1]} : vector<12x12x128xf32> to vector<12x11x128xf32>
    %4 = vector.extract_strided_slice %2 {offsets = [0, 0, 0], sizes = [12, 1, 128], strides = [1, 1, 1]} : vector<12x4x128xf32> to vector<12x1x128xf32>
    %5 = tpu.concatenate %3, %4 in 1 : vector<12x11x128xf32>, vector<12x1x128xf32> -> vector<12x12x128xf32>
    %6 = arith.subf %5, %0 : vector<12x12x128xf32>
    %cst_3 = arith.constant 0.000000e+00 : f32
    %7 = vector.broadcast %cst_3 : f32 to vector<12x12x128xf32>
    %8 = arith.maximumf %6, %7 : vector<12x12x128xf32>
    %9 = vector.extract_strided_slice %8 {offsets = [1, 0, 0], sizes = [11, 12, 128], strides = [1, 1, 1]} : vector<12x12x128xf32> to vector<11x12x128xf32>
    %10 = vector.extract_strided_slice %1 {offsets = [0, 0, 0], sizes = [1, 12, 128], strides = [1, 1, 1]} : vector<4x12x128xf32> to vector<1x12x128xf32>
    %11 = tpu.concatenate %9, %10 in 0 : vector<11x12x128xf32>, vector<1x12x128xf32> -> vector<12x12x128xf32>
    %12 = arith.subf %11, %8 : vector<12x12x128xf32>
    %cst_4 = arith.constant 0.000000e+00 : f32
    %13 = vector.broadcast %cst_4 : f32 to vector<12x12x128xf32>
    %14 = arith.maximumf %12, %13 : vector<12x12x128xf32>
    %15 = vector.extract_strided_slice %14 {offsets = [0, 1, 0], sizes = [12, 11, 128], strides = [1, 1, 1]} : vector<12x12x128xf32> to vector<12x11x128xf32>
    %16 = vector.extract_strided_slice %2 {offsets = [0, 0, 0], sizes = [12, 1, 128], strides = [1, 1, 1]} : vector<12x4x128xf32> to vector<12x1x128xf32>
    %17 = tpu.concatenate %15, %16 in 1 : vector<12x11x128xf32>, vector<12x1x128xf32> -> vector<12x12x128xf32>
    %18 = vector.extract_strided_slice %14 {offsets = [1, 0, 0], sizes = [11, 12, 128], strides = [1, 1, 1]} : vector<12x12x128xf32> to vector<11x12x128xf32>
    %19 = vector.extract_strided_slice %1 {offsets = [0, 0, 0], sizes = [1, 12, 128], strides = [1, 1, 1]} : vector<4x12x128xf32> to vector<1x12x128xf32>
    %20 = tpu.concatenate %18, %19 in 0 : vector<11x12x128xf32>, vector<1x12x128xf32> -> vector<12x12x128xf32>
    %21 = arith.subf %17, %20 : vector<12x12x128xf32>
    %cst_5 = arith.constant 0.000000e+00 : f32
    %22 = vector.broadcast %cst_5 : f32 to vector<12x12x128xf32>
    %23 = arith.maximumf %21, %22 : vector<12x12x128xf32>
    %24 = vector.extract_strided_slice %23 {offsets = [0, 1, 0], sizes = [12, 11, 128], strides = [1, 1, 1]} : vector<12x12x128xf32> to vector<12x11x128xf32>
    %25 = vector.extract_strided_slice %2 {offsets = [0, 0, 0], sizes = [12, 1, 128], strides = [1, 1, 1]} : vector<12x4x128xf32> to vector<12x1x128xf32>
    %26 = tpu.concatenate %24, %25 in 1 : vector<12x11x128xf32>, vector<12x1x128xf32> -> vector<12x12x128xf32>
    %27 = vector.extract_strided_slice %26 {offsets = [1, 0, 0], sizes = [11, 12, 128], strides = [1, 1, 1]} : vector<12x12x128xf32> to vector<11x12x128xf32>
    %28 = vector.extract_strided_slice %1 {offsets = [0, 0, 0], sizes = [1, 12, 128], strides = [1, 1, 1]} : vector<4x12x128xf32> to vector<1x12x128xf32>
    %29 = tpu.concatenate %27, %28 in 0 : vector<11x12x128xf32>, vector<1x12x128xf32> -> vector<12x12x128xf32>
    %30 = arith.subf %23, %29 : vector<12x12x128xf32>
    %cst_6 = arith.constant 0.000000e+00 : f32
    %31 = vector.broadcast %cst_6 : f32 to vector<12x12x128xf32>
    %32 = arith.maximumf %30, %31 : vector<12x12x128xf32>
    %33 = vector.extract_strided_slice %32 {offsets = [1, 0, 0], sizes = [11, 12, 128], strides = [1, 1, 1]} : vector<12x12x128xf32> to vector<11x12x128xf32>
    %34 = vector.extract_strided_slice %1 {offsets = [0, 0, 0], sizes = [1, 12, 128], strides = [1, 1, 1]} : vector<4x12x128xf32> to vector<1x12x128xf32>
    %35 = tpu.concatenate %33, %34 in 0 : vector<11x12x128xf32>, vector<1x12x128xf32> -> vector<12x12x128xf32>
    %36 = arith.maximumf %32, %35 : vector<12x12x128xf32>
    %37 = vector.extract_strided_slice %36 {offsets = [2, 0, 0], sizes = [10, 12, 128], strides = [1, 1, 1]} : vector<12x12x128xf32> to vector<10x12x128xf32>
    %38 = vector.extract_strided_slice %1 {offsets = [0, 0, 0], sizes = [2, 12, 128], strides = [1, 1, 1]} : vector<4x12x128xf32> to vector<2x12x128xf32>
    %39 = tpu.concatenate %37, %38 in 0 : vector<10x12x128xf32>, vector<2x12x128xf32> -> vector<12x12x128xf32>
    %40 = arith.maximumf %36, %39 : vector<12x12x128xf32>
    %41 = vector.extract_strided_slice %36 {offsets = [4, 0, 0], sizes = [8, 12, 128], strides = [1, 1, 1]} : vector<12x12x128xf32> to vector<8x12x128xf32>
    %42 = tpu.concatenate %41, %1 in 0 : vector<8x12x128xf32>, vector<4x12x128xf32> -> vector<12x12x128xf32>
    %43 = arith.maximumf %40, %42 : vector<12x12x128xf32>
    %44 = vector.extract_strided_slice %43 {offsets = [0, 1, 0], sizes = [12, 11, 128], strides = [1, 1, 1]} : vector<12x12x128xf32> to vector<12x11x128xf32>
    %45 = vector.extract_strided_slice %2 {offsets = [0, 0, 0], sizes = [12, 1, 128], strides = [1, 1, 1]} : vector<12x4x128xf32> to vector<12x1x128xf32>
    %46 = tpu.concatenate %44, %45 in 1 : vector<12x11x128xf32>, vector<12x1x128xf32> -> vector<12x12x128xf32>
    %47 = arith.maximumf %43, %46 : vector<12x12x128xf32>
    %48 = vector.extract_strided_slice %47 {offsets = [0, 2, 0], sizes = [12, 10, 128], strides = [1, 1, 1]} : vector<12x12x128xf32> to vector<12x10x128xf32>
    %49 = vector.extract_strided_slice %2 {offsets = [0, 0, 0], sizes = [12, 2, 128], strides = [1, 1, 1]} : vector<12x4x128xf32> to vector<12x2x128xf32>
    %50 = tpu.concatenate %48, %49 in 1 : vector<12x10x128xf32>, vector<12x2x128xf32> -> vector<12x12x128xf32>
    %51 = arith.maximumf %47, %50 : vector<12x12x128xf32>
    %52 = vector.extract_strided_slice %47 {offsets = [0, 4, 0], sizes = [12, 8, 128], strides = [1, 1, 1]} : vector<12x12x128xf32> to vector<12x8x128xf32>
    %53 = tpu.concatenate %52, %2 in 1 : vector<12x8x128xf32>, vector<12x4x128xf32> -> vector<12x12x128xf32>
    %54 = arith.maximumf %51, %53 : vector<12x12x128xf32>
    %55 = vector.shape_cast %54 : vector<12x12x128xf32> to vector<2x6x12x128xf32>
    %56 = vector.extract_strided_slice %55 {offsets = [0, 0, 0, 0], sizes = [2, 1, 12, 128], strides = [1, 1, 1, 1]} : vector<2x6x12x128xf32> to vector<2x1x12x128xf32>
    %57 = vector.shape_cast %56 : vector<2x1x12x128xf32> to vector<2x12x128xf32>
    %58 = vector.extract_strided_slice %57 {offsets = [0, 0, 0], sizes = [2, 1, 128], strides = [1, 1, 1]} : vector<2x12x128xf32> to vector<2x1x128xf32>
    %59 = vector.extract_strided_slice %57 {offsets = [0, 6, 0], sizes = [2, 1, 128], strides = [1, 1, 1]} : vector<2x12x128xf32> to vector<2x1x128xf32>
    %60 = tpu.concatenate %58, %59 in 1 : vector<2x1x128xf32>, vector<2x1x128xf32> -> vector<2x2x128xf32>
    %c0_7 = arith.constant 0 : index
    %c0_8 = arith.constant 0 : index
    %c0_9 = arith.constant 0 : index
    %61 = vector.load %arg2[%c0_7, %c0_8, %c0_9] : memref<2x2x128xf32, #tpu.memory_space<vmem>>, vector<2x2x128xf32>
    tpu.vector_store %arg2[%c0_7, %c0_8, %c0_9], %60 {strides = array<i32>} : memref<2x2x128xf32, #tpu.memory_space<vmem>>, vector<2x2x128xf32>,
    return
  }
  func.func @transform_0(%arg0: i32) -> (i32, i32, i32) {
    %c0_i32 = arith.constant 0 : i32
    %c0_i32_0 = arith.constant 0 : i32
    %c0_i32_1 = arith.constant 0 : i32
    return %c0_i32, %c0_i32_0, %arg0 : i32, i32, i32
  }
  func.func @transform_1(%arg0: i32) -> (i32, i32, i32) {
    %c0_i32 = arith.constant 0 : i32
    %c0_i32_0 = arith.constant 0 : i32
    %c0_i32_1 = arith.constant 0 : i32
    return %c0_i32, %c0_i32_0, %arg0 : i32, i32, i32
  }
}

</mosaic_0001>

<bundles_post_ra>
// kernel: tpu_custom_call.1
= control target key start
LH: loop header
LB: loop body
LE: loop exit
PB: predicated region body
PF: predicated region fallthrough
CT: control target
= control target key end

     0   :  { %6 = vsyncpa [#allocation3], 0  ;;  %s1080_s0 = inlined_call_operand.hbm [shape: f32[12,12,128], index: 0, kind: input, shape index: {}]   ;;  %s1081_s1 = inlined_call_operand.hbm [shape: f32[2,2,128], index: 1, kind: output, shape index: {}]  }
   0x1   :  { %7 = vsyncpa [#allocation4], 0  ;;  %s12_s8 = sshll.u32 %s1080_s0, 4  ;;  %s673_s9 = smov [#allocation2]   ;;  %s13_s8 = int_to_ptr.hbm [resolvable:$true] %s12_s8 }
   0x2   :  { %s14_s10 = sshll.u32 %s673_s9, 4  ;;  %s674_s11 = smov 128   ;;  %s15_s10 = int_to_ptr.vmem [resolvable:$true] %s14_s10 }
   0x3   :  { %s675_s12 = smov 8  }
   0x4   :  { %20 = dma.hbm_to_vmem [thread:$0]  %s13_s8, 3072, %s15_s10, [#allocation3], %s674_s11, %s674_s11, %s675_s12  }
   0x5   :  { %669 = dma.done.wait [#allocation3], 3072  }
   0x6   :  { %670 = vsyncadd [#allocation3], 4294964224  ;;  %v692_v0 = vld [vmem:[#allocation2] sm:$0xff]  ;;  %v694_v1 = vld [vmem:[#allocation2 + $0x8] sm:$0xf]  ;;  %vm73_vm0 = vcmask 1046528  }
   0x7   :  { %v696_v2 = vld [vmem:[#allocation2 + $0x10] sm:$0xff]  ;;  %v698_v3 = vld [vmem:[#allocation2 + $0x18] sm:$0xf]  ;;  %v700_v4 = vld [vmem:[#allocation2 + $0x20] sm:$0xff]  ;;  %v74_v6 = vrot.slane %v692_v0, 1  ;;  %v75_v8 = vrot.slane %v694_v1, 1 }
   0x8   :  { %v702_v5 = vld [vmem:[#allocation2 + $0x28] sm:$0xf]  ;;  %v705_v7 = vld [vmem:[#allocation2 + $0x30] sm:$0xff]  ;;  %v77_v9 = vrot.slane %v696_v2, 1  ;;  %v709_v10 = vld [vmem:[#allocation2 + $0x38] sm:$0xf] }
   0x9   :  { %v711_v11 = vld [vmem:[#allocation2 + $0x40] sm:$0xff]  ;;  %v78_v12 = vrot.slane %v698_v3, 1  ;;  %v714_v13 = vld [vmem:[#allocation2 + $0x48] sm:$0xf]  ;;  %v716_v14 = vld [vmem:[#allocation2 + $0x50] sm:$0xff]  ;;  %v719_v15 = vsel %vm73_vm0, %v74_v6, %v75_v8  ;;  %v80_v16 = vrot.slane %v700_v4, 1 }
   0xa   :  { %v81_v17 = vrot.slane %v702_v5, 1  ;;  %vm134_vm1 = vcmask 1042432   ;;  %v723_v18 = vld [vmem:[#allocation2 + $0x58] sm:$0xf]  ;;  %v725_v19 = vld [vmem:[#allocation2 + $0x60] sm:$0xff]  ;;  %v83_v22 = vrot.slane %v705_v7, 1  ;;  %v147_v33 = vsub.f32 %v719_v15, %v692_v0 }
   0xb   :  { %v727_v20 = vld [vmem:[#allocation2 + $0x68] sm:$0xf]  ;;  %v730_v21 = vsel %vm73_vm0, %v77_v9, %v78_v12  ;;  %v733_v23 = vld [vmem:[#allocation2 + $0x70] sm:$0xff]  ;;  %v735_v24 = vld [vmem:[#allocation2 + $0x78] sm:$0xf]  ;;  %v84_v27 = vrot.slane %v709_v10, 1 }
   0xc   :  { %v737_v25 = vld [vmem:[#allocation2 + $0x80] sm:$0xff]  ;;  %v740_v26 = vsel %vm73_vm0, %v80_v16, %v81_v17  ;;  %v86_v28 = vrot.slane %v711_v11, 1  ;;  %v744_v29 = vld [vmem:[#allocation2 + $0x88] sm:$0xf]  ;;  %v746_v30 = vld [vmem:[#allocation2 + $0x90] sm:$0xff]  ;;  %v87_v32 = vrot.slane %v714_v13, 1  ;;  %v149_v34 = vsub.f32 %v730_v21, %v696_v2 }
   0xd   :  { %v748_v31 = vld [vmem:[#allocation2 + $0x98] sm:$0xf]  ;;  %v151_v35 = vsub.f32 %v740_v26, %v700_v4  ;;  %v757_v36 = vld [vmem:[#allocation2 + $0xa0] sm:$0xff]  ;;  %v759_v37 = vld [vmem:[#allocation2 + $0xa8] sm:$0xf]  ;;  %v762_v38 = vsel %vm73_vm0, %v83_v22, %v84_v27  ;;  %v89_v39 = vrot.slane %v716_v14, 1 }
   0xe   :  { %v90_v40 = vrot.slane %v723_v18, 1  ;;  %v92_v41 = vrot.slane %v725_v19, 1  ;;  %v767_v42 = vld [vmem:[#allocation2 + $0xb0] sm:$0xff]  ;;  %v769_v43 = vld [vmem:[#allocation2 + $0xb8] sm:$0xf]  ;;  %v88_v44 = vsel %vm73_vm0, %v86_v28, %v87_v32  ;;  %v93_v45 = vrot.slane %v727_v20, 1 }
   0xf   :  { %v95_v46 = vrot.slane %v733_v23, 1  ;;  %v96_v47 = vrot.slane %v735_v24, 1  ;;  %v98_v49 = vrot.slane %v737_v25, 1  ;;  %v99_v50 = vrot.slane %v744_v29, 1  ;;  %s676_s0 = smov [#allocation5]   ;;  %s602_s16 = sshll.u32 %s1081_s1, 4  ;;  %s603_s16 = int_to_ptr.hbm [resolvable:$true] %s602_s16 }
  0x10   :  { %v91_v48 = vsel %vm73_vm0, %v89_v39, %v90_v40  ;;  %v101_v51 = vrot.slane %v746_v30, 1  ;;  %v94_v52 = vsel %vm73_vm0, %v92_v41, %v93_v45  ;;  %v102_v54 = vrot.slane %v748_v31, 1  ;;  %s600_s13 = sshll.u32 %s676_s0, 4  ;;  %s677_s17 = smov 32   ;;  %s601_s13 = int_to_ptr.vmem [resolvable:$true] %s600_s13 }
  0x11   :  { %v97_v53 = vsel %vm73_vm0, %v95_v46, %v96_v47  ;;  %v104_v55 = vrot.slane %v757_v36, 1  ;;  %v100_v56 = vsel %vm73_vm0, %v98_v49, %v99_v50  ;;  %v105_v57 = vrot.slane %v759_v37, 1  ;;  %s678_s18 = smov 2  }
  0x12   :  { %v107_v58 = vrot.slane %v767_v42, 1  ;;  %v108_v59 = vrot.slane %v769_v43, 1  ;;  %v103_v60 = vsel %vm73_vm0, %v101_v51, %v102_v54  ;;  %v135_v61 = vsel %vm134_vm1, %v75_v8, 0.0 }
  0x13   :  { %v136_v62 = vsel %vm134_vm1, %v78_v12, 0.0  ;;  %v137_v63 = vsel %vm134_vm1, %v81_v17, 0.0  ;;  %v106_v6 = vsel %vm73_vm0, %v104_v55, %v105_v57  ;;  %v138_v16 = vsel %vm134_vm1, %v84_v27, 0.0 }
  0x14   :  { %v109_v9 = vsel %vm73_vm0, %v107_v58, %v108_v59  ;;  %v139_v22 = vsel %vm134_vm1, %v87_v32, 0.0  ;;  %v140_v28 = vsel %vm134_vm1, %v90_v40, 0.0  ;;  %v141_v39 = vsel %vm134_vm1, %v93_v45, 0.0 }
  0x15   :  { %v142_v41 = vsel %vm134_vm1, %v96_v47, 0.0  ;;  %v143_v8 = vsel %vm134_vm1, %v99_v50, 0.0  ;;  %v144_v12 = vsel %vm134_vm1, %v102_v54, 0.0  ;;  %v145_v17 = vsel %vm134_vm1, %v105_v57, 0.0 }
  0x16   :  { %v146_v46 = vsel %vm134_vm1, %v108_v59, 0.0  ;;  %v148_v49 = vsub.f32 %v135_v61, %v694_v1  ;;  %v150_v27 = vsub.f32 %v136_v62, %v698_v3  ;;  %v152_v32 = vsub.f32 %v137_v63, %v702_v5 }
  0x17   :  { %v153_v40 = vsub.f32 %v762_v38, %v705_v7  ;;  %v154_v45 = vsub.f32 %v138_v16, %v709_v10  ;;  %v155_v47 = vsub.f32 %v88_v44, %v711_v11  ;;  %v156_v50 = vsub.f32 %v139_v22, %v714_v13 }
  0x18   :  { %v157_v51 = vsub.f32 %v91_v48, %v716_v14  ;;  %v158_v54 = vsub.f32 %v140_v28, %v723_v18  ;;  %v159_v55 = vsub.f32 %v94_v52, %v725_v19  ;;  %v160_v1 = vsub.f32 %v141_v39, %v727_v20 }
  0x19   :  { %v161_v3 = vsub.f32 %v97_v53, %v733_v23  ;;  %v162_v5 = vsub.f32 %v142_v41, %v735_v24  ;;  %v163_v7 = vsub.f32 %v100_v56, %v737_v25  ;;  %v164_v10 = vsub.f32 %v143_v8, %v744_v29 }
  0x1a   :  { %v165_v11 = vsub.f32 %v103_v60, %v746_v30  ;;  %v166_v13 = vsub.f32 %v144_v12, %v748_v31  ;;  %v167_v14 = vsub.f32 %v106_v6, %v757_v36  ;;  %v168_v18 = vsub.f32 %v145_v17, %v759_v37 }
  0x1b   :  { %v169_v19 = vsub.f32 %v109_v9, %v767_v42  ;;  %v170_v20 = vsub.f32 %v146_v46, %v769_v43  ;;  %v171_v23 = vmax.f32 %v147_v33, 0.0  ;;  %v172_v24 = vmax.f32 %v148_v49, 0.0 }
  0x1c   :  { %v173_v25 = vmax.f32 %v149_v34, 0.0  ;;  %v174_v29 = vmax.f32 %v150_v27, 0.0  ;;  %v175_v30 = vmax.f32 %v151_v35, 0.0  ;;  %v176_v31 = vmax.f32 %v152_v32, 0.0 }
  0x1d   :  { %v177_v36 = vmax.f32 %v153_v40, 0.0  ;;  %v178_v37 = vmax.f32 %v154_v45, 0.0  ;;  %v179_v38 = vmax.f32 %v155_v47, 0.0  ;;  %v180_v42 = vmax.f32 %v156_v50, 0.0 }
  0x1e   :  { %v181_v43 = vmax.f32 %v157_v51, 0.0  ;;  %v182_v44 = vmax.f32 %v158_v54, 0.0  ;;  %v183_v48 = vmax.f32 %v159_v55, 0.0  ;;  %v184_v0 = vmax.f32 %v160_v1, 0.0 }
  0x1f   :  { %v185_v15 = vmax.f32 %v161_v3, 0.0  ;;  %v186_v33 = vmax.f32 %v162_v5, 0.0  ;;  %v187_v52 = vmax.f32 %v163_v7, 0.0  ;;  %v188_v53 = vmax.f32 %v164_v10, 0.0 }
  0x20   :  { %v189_v2 = vmax.f32 %v165_v11, 0.0  ;;  %v190_v21 = vmax.f32 %v166_v13, 0.0  ;;  %v191_v34 = vmax.f32 %v167_v14, 0.0  ;;  %v192_v56 = vmax.f32 %v168_v18, 0.0 }
  0x21   :  { %v193_v57 = vmax.f32 %v169_v19, 0.0  ;;  %v194_v4 = vmax.f32 %v170_v20, 0.0  ;;  %v195_v26 = vsub.f32 %v173_v25, %v171_v23  ;;  %v196_v35 = vsub.f32 %v174_v29, %v172_v24 }
  0x22   :  { %v197_v58 = vsub.f32 %v175_v30, %v173_v25  ;;  %v198_v59 = vsub.f32 %v176_v31, %v174_v29  ;;  %v199_v60 = vsub.f32 %v177_v36, %v175_v30  ;;  %v200_v61 = vsub.f32 %v178_v37, %v176_v31 }
  0x23   :  { %v201_v62 = vsub.f32 %v179_v38, %v177_v36  ;;  %v202_v63 = vsub.f32 %v180_v42, %v178_v37  ;;  %v203_v6 = vsub.f32 %v181_v43, %v179_v38  ;;  %v204_v9 = vsub.f32 %v182_v44, %v180_v42 }
  0x24   :  { %v205_v16 = vsub.f32 %v183_v48, %v181_v43  ;;  %v206_v22 = vsub.f32 %v184_v0, %v182_v44  ;;  %v207_v28 = vsub.f32 %v185_v15, %v183_v48  ;;  %v208_v39 = vsub.f32 %v186_v33, %v184_v0 }
  0x25   :  { %v209_v41 = vsub.f32 %v187_v52, %v185_v15  ;;  %v210_v8 = vsub.f32 %v188_v53, %v186_v33  ;;  %v211_v12 = vsub.f32 %v189_v2, %v187_v52  ;;  %v212_v17 = vsub.f32 %v190_v21, %v188_v53 }
  0x26   :  { %v213_v46 = vsub.f32 %v191_v34, %v189_v2  ;;  %v214_v49 = vsub.f32 %v192_v56, %v190_v21  ;;  %v215_v27 = vsub.f32 %v193_v57, %v191_v34  ;;  %v216_v32 = vsub.f32 %v194_v4, %v192_v56 }
  0x27   :  { %v217_v40 = vsub.f32 0.0, %v193_v57  ;;  %v218_v45 = vsub.f32 0.0, %v194_v4  ;;  %v219_v47 = vmax.f32 %v195_v26, 0.0  ;;  %v220_v50 = vmax.f32 %v196_v35, 0.0 }
  0x28   :  { %v833_v51 = vmax.f32 %v197_v58, 0.0  ;;  %v835_v54 = vmax.f32 %v198_v59, 0.0  ;;  %v837_v55 = vmax.f32 %v199_v60, 0.0  ;;  %v839_v1 = vmax.f32 %v200_v61, 0.0 }
  0x29   :  { %v841_v3 = vmax.f32 %v201_v62, 0.0  ;;  %v843_v5 = vmax.f32 %v202_v63, 0.0  ;;  %v845_v7 = vmax.f32 %v203_v6, 0.0  ;;  %v847_v10 = vmax.f32 %v204_v9, 0.0 }
  0x2a   :  { %v849_v11 = vmax.f32 %v205_v16, 0.0  ;;  %v851_v13 = vmax.f32 %v206_v22, 0.0  ;;  %v853_v14 = vmax.f32 %v207_v28, 0.0  ;;  %v855_v18 = vmax.f32 %v208_v39, 0.0 }
  0x2b   :  { %v857_v19 = vmax.f32 %v209_v41, 0.0  ;;  %v859_v20 = vmax.f32 %v210_v8, 0.0  ;;  %v861_v23 = vmax.f32 %v211_v12, 0.0  ;;  %v863_v24 = vmax.f32 %v212_v17, 0.0 }
  0x2c   :  { %v865_v25 = vmax.f32 %v213_v46, 0.0  ;;  %v867_v29 = vmax.f32 %v214_v49, 0.0  ;;  %v869_v30 = vmax.f32 %v215_v27, 0.0  ;;  %v871_v31 = vmax.f32 %v216_v32, 0.0 }
  0x2d   :  { %v873_v36 = vmax.f32 %v217_v40, 0.0  ;;  %v875_v37 = vmax.f32 %v218_v45, 0.0  ;;  %v267_v38 = vrot.slane %v219_v47, 1  ;;  %v268_v42 = vrot.slane %v220_v50, 1 }
  0x2e   :  { %v270_v43 = vrot.slane %v833_v51, 1  ;;  %v271_v44 = vrot.slane %v835_v54, 1  ;;  %v273_v48 = vrot.slane %v837_v55, 1  ;;  %v274_v0 = vrot.slane %v839_v1, 1 }
  0x2f   :  { %v276_v15 = vrot.slane %v841_v3, 1  ;;  %v277_v33 = vrot.slane %v843_v5, 1  ;;  %v269_v52 = vsel %vm73_vm0, %v267_v38, %v268_v42  ;;  %v279_v2 = vrot.slane %v845_v7, 1 }
  0x30   :  { %v885_v53 = vsel %vm73_vm0, %v270_v43, %v271_v44  ;;  %v280_v21 = vrot.slane %v847_v10, 1  ;;  %v275_v34 = vsel %vm73_vm0, %v273_v48, %v274_v0  ;;  %v282_v57 = vrot.slane %v849_v11, 1 }
  0x31   :  { %v891_v56 = vsel %vm73_vm0, %v276_v15, %v277_v33  ;;  %v283_v4 = vrot.slane %v851_v13, 1  ;;  %v285_v35 = vrot.slane %v853_v14, 1  ;;  %v286_v58 = vrot.slane %v855_v18, 1 }
  0x32   :  { %v281_v26 = vsel %vm73_vm0, %v279_v2, %v280_v21  ;;  %v288_v59 = vrot.slane %v857_v19, 1  ;;  %v289_v61 = vrot.slane %v859_v20, 1  ;;  %v291_v62 = vrot.slane %v861_v23, 1 }
  0x33   :  { %v284_v60 = vsel %vm73_vm0, %v282_v57, %v283_v4  ;;  %v292_v63 = vrot.slane %v863_v24, 1  ;;  %v287_v6 = vsel %vm73_vm0, %v285_v35, %v286_v58  ;;  %v294_v9 = vrot.slane %v865_v25, 1 }
  0x34   :  { %v295_v16 = vrot.slane %v867_v29, 1  ;;  %v297_v22 = vrot.slane %v869_v30, 1  ;;  %v290_v28 = vsel %vm73_vm0, %v288_v59, %v289_v61  ;;  %v298_v41 = vrot.slane %v871_v31, 1 }
  0x35   :  { %v293_v39 = vsel %vm73_vm0, %v291_v62, %v292_v63  ;;  %v300_v8 = vrot.slane %v873_v36, 1  ;;  %v301_v17 = vrot.slane %v875_v37, 1  ;;  %v327_v46 = vsel %vm134_vm1, %v268_v42, 0.0 }
  0x36   :  { %v296_v12 = vsel %vm73_vm0, %v294_v9, %v295_v16  ;;  %v328_v49 = vsel %vm134_vm1, %v271_v44, 0.0  ;;  %v299_v27 = vsel %vm73_vm0, %v297_v22, %v298_v41  ;;  %v329_v32 = vsel %vm134_vm1, %v274_v0, 0.0 }
  0x37   :  { %v330_v40 = vsel %vm134_vm1, %v277_v33, 0.0  ;;  %v331_v45 = vsel %vm134_vm1, %v280_v21, 0.0  ;;  %v920_v47 = vsel %vm73_vm0, %v300_v8, %v301_v17  ;;  %v332_v50 = vsel %vm134_vm1, %v283_v4, 0.0 }
  0x38   :  { %v333_v38 = vsel %vm134_vm1, %v286_v58, 0.0  ;;  %v334_v43 = vsel %vm134_vm1, %v289_v61, 0.0  ;;  %v335_v42 = vsel %vm134_vm1, %v292_v63, 0.0  ;;  %v336_v44 = vsel %vm134_vm1, %v295_v16, 0.0 }
  0x39   :  { %v337_v48 = vsel %vm134_vm1, %v298_v41, 0.0  ;;  %v929_v0 = vsel %vm134_vm1, %v301_v17, 0.0  ;;  %v339_v15 = vsub.f32 %v269_v52, %v833_v51  ;;  %v340_v33 = vsub.f32 %v327_v46, %v835_v54 }
  0x3a   :  { %v341_v2 = vsub.f32 %v885_v53, %v837_v55  ;;  %v342_v21 = vsub.f32 %v328_v49, %v839_v1  ;;  %v343_v57 = vsub.f32 %v275_v34, %v841_v3  ;;  %v344_v4 = vsub.f32 %v329_v32, %v843_v5 }
  0x3b   :  { %v345_v35 = vsub.f32 %v891_v56, %v845_v7  ;;  %v346_v58 = vsub.f32 %v330_v40, %v847_v10  ;;  %v347_v59 = vsub.f32 %v281_v26, %v849_v11  ;;  %v348_v51 = vsub.f32 %v331_v45, %v851_v13 }
  0x3c   :  { %v349_v54 = vsub.f32 %v284_v60, %v853_v14  ;;  %v350_v52 = vsub.f32 %v332_v50, %v855_v18  ;;  %v351_v55 = vsub.f32 %v287_v6, %v857_v19  ;;  %v352_v1 = vsub.f32 %v333_v38, %v859_v20 }
  0x3d   :  { %v353_v3 = vsub.f32 %v290_v28, %v861_v23  ;;  %v354_v5 = vsub.f32 %v334_v43, %v863_v24  ;;  %v355_v7 = vsub.f32 %v293_v39, %v865_v25  ;;  %v356_v10 = vsub.f32 %v335_v42, %v867_v29 }
  0x3e   :  { %v357_v11 = vsub.f32 %v296_v12, %v869_v30  ;;  %v358_v13 = vsub.f32 %v336_v44, %v871_v31  ;;  %v359_v14 = vsub.f32 %v299_v27, %v873_v36  ;;  %v360_v18 = vsub.f32 %v337_v48, %v875_v37 }
  0x3f   :  { %v955_v53 = vmax.f32 %v339_v15, 0.0  ;;  %v957_v19 = vmax.f32 %v340_v33, 0.0  ;;  %v959_v20 = vmax.f32 %v341_v2, 0.0  ;;  %v961_v23 = vmax.f32 %v342_v21, 0.0 }
  0x40   :  { %v963_v24 = vmax.f32 %v343_v57, 0.0  ;;  %v965_v25 = vmax.f32 %v344_v4, 0.0  ;;  %v967_v29 = vmax.f32 %v345_v35, 0.0  ;;  %v969_v30 = vmax.f32 %v346_v58, 0.0 }
  0x41   :  { %v971_v31 = vmax.f32 %v347_v59, 0.0  ;;  %v973_v36 = vmax.f32 %v348_v51, 0.0  ;;  %v975_v37 = vmax.f32 %v349_v54, 0.0  ;;  %v977_v34 = vmax.f32 %v350_v52, 0.0 }
  0x42   :  { %v979_v56 = vmax.f32 %v351_v55, 0.0  ;;  %v981_v26 = vmax.f32 %v352_v1, 0.0  ;;  %v983_v60 = vmax.f32 %v353_v3, 0.0  ;;  %v985_v61 = vmax.f32 %v354_v5, 0.0 }
  0x43   :  { %v987_v62 = vmax.f32 %v355_v7, 0.0  ;;  %v989_v63 = vmax.f32 %v356_v10, 0.0  ;;  %v991_v6 = vmax.f32 %v357_v11, 0.0  ;;  %v993_v9 = vmax.f32 %v358_v13, 0.0 }
  0x44   :  { %v995_v16 = vmax.f32 %v359_v14, 0.0  ;;  %v997_v22 = vmax.f32 %v360_v18, 0.0  ;;  %v383_v28 = vmax.f32 %v920_v47, 0.0  ;;  %v384_v39 = vmax.f32 %v929_v0, 0.0 }
  0x45   :  { %v407_v41 = vrot.slane %v959_v20, 1  ;;  %v408_v8 = vrot.slane %v961_v23, 1  ;;  %v410_v12 = vrot.slane %v963_v24, 1  ;;  %v411_v17 = vrot.slane %v965_v25, 1 }
  0x46   :  { %v413_v46 = vrot.slane %v967_v29, 1  ;;  %v414_v49 = vrot.slane %v969_v30, 1  ;;  %v416_v32 = vrot.slane %v971_v31, 1  ;;  %v417_v40 = vrot.slane %v973_v36, 1 }
  0x47   :  { %v409_v27 = vsel %vm73_vm0, %v407_v41, %v408_v8  ;;  %v419_v45 = vrot.slane %v975_v37, 1  ;;  %v412_v50 = vsel %vm73_vm0, %v410_v12, %v411_v17  ;;  %v420_v43 = vrot.slane %v977_v34, 1 }
  0x48   :  { %v415_v38 = vsel %vm73_vm0, %v413_v46, %v414_v49  ;;  %v422_v42 = vrot.slane %v979_v56, 1  ;;  %v418_v44 = vsel %vm73_vm0, %v416_v32, %v417_v40  ;;  %v423_v48 = vrot.slane %v981_v26, 1 }
  0x49   :  { %v425_v15 = vrot.slane %v983_v60, 1  ;;  %v426_v33 = vrot.slane %v985_v61, 1  ;;  %v421_v2 = vsel %vm73_vm0, %v419_v45, %v420_v43  ;;  %v428_v21 = vrot.slane %v987_v62, 1 }
  0x4a   :  { %v429_v57 = vrot.slane %v989_v63, 1  ;;  %v431_v4 = vrot.slane %v991_v6, 1  ;;  %v424_v35 = vsel %vm73_vm0, %v422_v42, %v423_v48  ;;  %v432_v59 = vrot.slane %v993_v9, 1 }
  0x4b   :  { %v427_v58 = vsel %vm73_vm0, %v425_v15, %v426_v33  ;;  %v434_v51 = vrot.slane %v995_v16, 1  ;;  %v435_v52 = vrot.slane %v997_v22, 1  ;;  %v437_v55 = vrot.slane %v383_v28, 1 }
  0x4c   :  { %v430_v54 = vsel %vm73_vm0, %v428_v21, %v429_v57  ;;  %v438_v1 = vrot.slane %v384_v39, 1  ;;  %v433_v3 = vsel %vm73_vm0, %v431_v4, %v432_v59  ;;  %v462_v5 = vsel %vm134_vm1, %v408_v8, 0.0 }
  0x4d   :  { %v463_v7 = vsel %vm134_vm1, %v411_v17, 0.0  ;;  %v464_v10 = vsel %vm134_vm1, %v414_v49, 0.0  ;;  %v436_v11 = vsel %vm73_vm0, %v434_v51, %v435_v52  ;;  %v465_v14 = vsel %vm134_vm1, %v417_v40, 0.0 }
  0x4e   :  { %v439_v13 = vsel %vm73_vm0, %v437_v55, %v438_v1  ;;  %v466_v18 = vsel %vm134_vm1, %v420_v43, 0.0  ;;  %v467_v41 = vsel %vm134_vm1, %v423_v48, 0.0  ;;  %v468_v12 = vsel %vm134_vm1, %v426_v33, 0.0 }
  0x4f   :  { %v469_v46 = vsel %vm134_vm1, %v429_v57, 0.0  ;;  %v470_v8 = vsel %vm134_vm1, %v432_v59, 0.0  ;;  %v471_v17 = vsel %vm134_vm1, %v435_v52, 0.0  ;;  %v472_v49 = vsel %vm134_vm1, %v438_v1, 0.0 }
  0x50   :  { %v473_v32 = vsub.f32 %v955_v53, %v409_v27  ;;  %v474_v45 = vsub.f32 %v957_v19, %v462_v5  ;;  %v475_v40 = vsub.f32 %v959_v20, %v412_v50  ;;  %v476_v43 = vsub.f32 %v961_v23, %v463_v7 }
  0x51   :  { %v477_v42 = vsub.f32 %v963_v24, %v415_v38  ;;  %v478_v48 = vsub.f32 %v965_v25, %v464_v10  ;;  %v479_v15 = vsub.f32 %v967_v29, %v418_v44  ;;  %v480_v33 = vsub.f32 %v969_v30, %v465_v14 }
  0x52   :  { %v481_v21 = vsub.f32 %v971_v31, %v421_v2  ;;  %v482_v57 = vsub.f32 %v973_v36, %v466_v18  ;;  %v483_v53 = vsub.f32 %v975_v37, %v424_v35  ;;  %v484_v19 = vsub.f32 %v977_v34, %v467_v41 }
  0x53   :  { %v485_v20 = vsub.f32 %v979_v56, %v427_v58  ;;  %v486_v23 = vsub.f32 %v981_v26, %v468_v12  ;;  %v487_v24 = vsub.f32 %v983_v60, %v430_v54  ;;  %v488_v25 = vsub.f32 %v985_v61, %v469_v46 }
  0x54   :  { %v489_v29 = vsub.f32 %v987_v62, %v433_v3  ;;  %v490_v30 = vsub.f32 %v989_v63, %v470_v8  ;;  %v491_v31 = vsub.f32 %v991_v6, %v436_v11  ;;  %v492_v36 = vsub.f32 %v993_v9, %v471_v17 }
  0x55   :  { %v493_v37 = vsub.f32 %v995_v16, %v439_v13  ;;  %v494_v34 = vsub.f32 %v997_v22, %v472_v49  ;;  %v495_v27 = vmax.f32 %v473_v32, 0.0  ;;  %v496_v56 = vmax.f32 %v474_v45, 0.0 }
  0x56   :  { %v497_v50 = vmax.f32 %v475_v40, 0.0  ;;  %v498_v26 = vmax.f32 %v476_v43, 0.0  ;;  %v499_v38 = vmax.f32 %v477_v42, 0.0  ;;  %v500_v60 = vmax.f32 %v478_v48, 0.0 }
  0x57   :  { %v501_v44 = vmax.f32 %v479_v15, 0.0  ;;  %v502_v61 = vmax.f32 %v480_v33, 0.0  ;;  %v503_v2 = vmax.f32 %v481_v21, 0.0  ;;  %v504_v62 = vmax.f32 %v482_v57, 0.0 }
  0x58   :  { %v505_v4 = vmax.f32 %v483_v53, 0.0  ;;  %v506_v63 = vmax.f32 %v484_v19, 0.0  ;;  %v507_v35 = vmax.f32 %v485_v20, 0.0  ;;  %v508_v6 = vmax.f32 %v486_v23, 0.0 }
  0x59   :  { %v509_v58 = vmax.f32 %v487_v24, 0.0  ;;  %v510_v9 = vmax.f32 %v488_v25, 0.0  ;;  %v511_v59 = vmax.f32 %v489_v29, 0.0  ;;  %v512_v16 = vmax.f32 %v490_v30, 0.0 }
  0x5a   :  { %v513_v51 = vmax.f32 %v491_v31, 0.0  ;;  %v514_v22 = vmax.f32 %v492_v36, 0.0  ;;  %v515_v54 = vmax.f32 %v493_v37, 0.0  ;;  %v516_v52 = vmax.f32 %v494_v34, 0.0 }
  0x5b   :  { %v517_v55 = vmax.f32 %v383_v28, 0.0  ;;  %v518_v1 = vmax.f32 %v384_v39, 0.0  ;;  %v519_v3 = vmax.f32 %v495_v27, %v497_v50  ;;  %v520_v5 = vmax.f32 %v496_v56, %v498_v26 }
  0x5c   :  { %v521_v7 = vmax.f32 %v499_v38, %v501_v44  ;;  %v522_v10 = vmax.f32 %v500_v60, %v502_v61  ;;  %v523_v11 = vmax.f32 %v503_v2, %v505_v4  ;;  %v524_v13 = vmax.f32 %v504_v62, %v506_v63 }
  0x5d   :  { %v525_v14 = vmax.f32 %v507_v35, %v509_v58  ;;  %v526_v18 = vmax.f32 %v508_v6, %v510_v9  ;;  %v527_v41 = vmax.f32 %v511_v59, %v513_v51  ;;  %v528_v12 = vmax.f32 %v512_v16, %v514_v22 }
  0x5e   :  { %v529_v46 = vmax.f32 %v515_v54, %v517_v55  ;;  %v530_v8 = vmax.f32 %v516_v52, %v518_v1  ;;  %v531_v17 = vmax.f32 %v519_v3, %v521_v7  ;;  %v532_v49 = vmax.f32 %v520_v5, %v522_v10 }
  0x5f   :  { %v533_v32 = vmax.f32 %v525_v14, %v527_v41  ;;  %v534_v47 = vmax.f32 %v526_v18, %v528_v12  ;;  %vm563_vm2 = vcmask 1045504   ;;  %vm574_vm3 = vcmask 1043456  }
  0x60   :  { %v535_v28 = vmax.f32 %v531_v17, %v523_v11  ;;  %v536_v45 = vmax.f32 %v532_v49, %v524_v13  ;;  %vm591_vm4 = vcmask 1040384  }
  0x61   :  { %v537_v0 = vmax.f32 %v533_v32, %v529_v46  ;;  %v538_v39 = vmax.f32 %v534_v47, %v530_v8 }
  0x62   :  { %v543_v40 = vrot.slane %v535_v28, 1  ;;  %v544_v43 = vrot.slane %v536_v45, 1 }
  0x63   :  { %v546_v42 = vrot.slane %v537_v0, 1  ;;  %v547_v48 = vrot.slane %v538_v39, 1 }
  0x64   :  { %v545_v15 = vsel %vm73_vm0, %v543_v40, %v544_v43  ;;  %v553_v33 = vsel %vm134_vm1, %v544_v43, 0.0 }
  0x65   :  { %v548_v21 = vsel %vm73_vm0, %v546_v42, %v547_v48  ;;  %v554_v57 = vsel %vm134_vm1, %v547_v48, 0.0  ;;  %v555_v53 = vmax.f32 %v535_v28, %v545_v15  ;;  %v556_v19 = vmax.f32 %v536_v45, %v553_v33 }
  0x66   :  { %v557_v20 = vmax.f32 %v537_v0, %v548_v21  ;;  %v558_v23 = vmax.f32 %v538_v39, %v554_v57 }
  0x67   :  { %v564_v24 = vrot.slane %v555_v53, 2  ;;  %v565_v25 = vrot.slane %v556_v19, 2  ;;  %v575_v29 = vrot.slane %v555_v53, 4  ;;  %v576_v30 = vrot.slane %v556_v19, 4 }
  0x68   :  { %v567_v31 = vrot.slane %v557_v20, 2  ;;  %v568_v36 = vrot.slane %v558_v23, 2  ;;  %v578_v37 = vrot.slane %v557_v20, 4  ;;  %v579_v34 = vrot.slane %v558_v23, 4 }
  0x69   :  { %v566_v27 = vsel %vm563_vm2, %v564_v24, %v565_v25  ;;  %v577_v56 = vsel %vm574_vm3, %v575_v29, %v576_v30 }
  0x6a   :  { %v569_v50 = vsel %vm563_vm2, %v567_v31, %v568_v36  ;;  %v572_v26 = vmax.f32 %v555_v53, %v566_v27  ;;  %v580_v38 = vsel %vm574_vm3, %v578_v37, %v579_v34 }
  0x6b   :  { %v573_v60 = vmax.f32 %v557_v20, %v569_v50 }
  0x6c   :  { %v583_v44 = vmax.f32 %v572_v26, %v577_v56 }
  0x6d   :  { %v584_v61 = vmax.f32 %v573_v60, %v580_v38 }
  0x6e   :  { %v587_v2 = vrot.slane %v583_v44, 5 }
  0x6f   :  { %v588_v62 = vrot.slane %v584_v61, 5 }
  0x70   :  { %v592_v4 = vsel %vm591_vm4, %v583_v44, %v587_v2 }
  0x71   :  { %v593_v63 = vsel %vm591_vm4, %v584_v61, %v588_v62  ;;  %594 = vst [vmem:[#allocation5] sm:$0x3] %v592_v4 }
  0x72   :  { %595 = vst [vmem:[#allocation5 + $0x2] sm:$0x3] %v593_v63 }
  0x73   :  { %608 = dma.vmem_to_hbm [thread:$0]  %s601_s13, 64, %s603_s16, [#allocation4], %s677_s17, %s677_s17, %s678_s18  }
  0x74   :  { %671 = dma.done.wait [#allocation4], 64  }
  0x75   :  { %672 = vsyncadd [#allocation4], 4294967232 }
  0x76   :  { %613 = vsyncpa [#allocation3], 1 }
  0x77   :  { %614 = vsyncpa [#allocation4], 1 }

</bundles_post_ra>
